<compile_context>
chip_gen: v7x
topology: tpu7x:2x2x1
jax: 0.10.0
libtpu: 0.0.40
codegen_flags: <defaults>
</compile_context>

<pallas_src>
import jax
import jax.numpy as jnp
from jax.experimental import pallas as pl
from jax.experimental.pallas import tpu as pltpu


def _round_up(x: int, m: int) -> int:
    return ((x + m - 1) // m) * m


# ----------------------------- Pallas kernel ------------------------------ #
def _linear_kernel(x_ref, w_ref, b_ref, o_ref, acc_ref):
    """One (tm, tn) output tile; the K (hidden) reduction is the last grid axis."""
    k = pl.program_id(2)

    @pl.when(k == 0)
    def _zero():
        acc_ref[...] = jnp.zeros_like(acc_ref)

    # bf16 x bf16 -> f32 accumulate on the MXU.
    acc_ref[...] += jnp.dot(
        x_ref[...], w_ref[...], preferred_element_type=jnp.float32
    )

    @pl.when(k == pl.num_programs(2) - 1)
    def _finalize():
        # Bias added once, in f32, on the resident accumulator (epilogue only).
        o_ref[...] = (acc_ref[...] + b_ref[...]).astype(o_ref.dtype)


def pallas_linear(x2d: jax.Array, w: jax.Array, b: jax.Array,
                  *, tm=None, tn=None, tk=None,
                  vmem_limit_bytes: int = 32 * 1024 * 1024) -> jax.Array:
    """Output layer: [M, H] @ [H, C] + [C] -> [M, C] as a tiled MXU matmul."""
    M, H = x2d.shape
    Hw, C = w.shape
    assert Hw == H and b.shape == (C,)

    # Production-oriented defaults, clamped so small problems stay single-tile.
    tm = tm if tm is not None else min(256, _round_up(M, 8))
    tn = tn if tn is not None else min(512, _round_up(C, 128))
    tk = tk if tk is not None else min(512, _round_up(H, 128))
    assert tm % 8 == 0 and tn % 128 == 0 and tk % 128 == 0

    Mp, Cp, Hp = _round_up(M, tm), _round_up(C, tn), _round_up(H, tk)

    # Feed the MXU bf16 operands; padded K contributes zeros, padded M/N rows
    # and columns are sliced off below.
    xp = jnp.pad(x2d.astype(jnp.bfloat16), ((0, Mp - M), (0, Hp - H)))
    wp = jnp.pad(w.astype(jnp.bfloat16), ((0, Hp - H), (0, Cp - C)))
    bp = jnp.pad(b.astype(jnp.float32), (0, Cp - C)).reshape(1, Cp)

    grid = (Mp // tm, Cp // tn, Hp // tk)   # reduction (K) axis last

    out = pl.pallas_call(
        _linear_kernel,
        out_shape=jax.ShapeDtypeStruct((Mp, Cp), jnp.float32),
        grid_spec=pltpu.PrefetchScalarGridSpec(
            num_scalar_prefetch=0,
            grid=grid,
            in_specs=[
                pl.BlockSpec((tm, tk), lambda i, j, k: (i, k)),   # activations
                pl.BlockSpec((tk, tn), lambda i, j, k: (k, j)),   # weights
                pl.BlockSpec((1, tn), lambda i, j, k: (0, j)),    # bias (j only)
            ],
            out_specs=pl.BlockSpec((tm, tn), lambda i, j, k: (i, j)),
            scratch_shapes=[pltpu.VMEM((tm, tn), jnp.float32)],
        ),
        compiler_params=pltpu.CompilerParams(
            dimension_semantics=("parallel", "parallel", "arbitrary"),
            vmem_limit_bytes=vmem_limit_bytes,
        ),
    )(xp, wp, bp)

    return out[:M, :C]


def linear_output_layer(x2d, w, b, *, force_pallas=False, tm=None, tn=None, tk=None):
    """Dispatch: tiny latency-bound shapes use a fused XLA dot, else Pallas."""
    M, H = x2d.shape
    C = w.shape[1]
    if not force_pallas and (M * C < 128 * 128 or H < 128):
        return x2d.astype(jnp.float32) @ w.astype(jnp.float32) + b.astype(jnp.float32)
    return pallas_linear(x2d, w, b, tm=tm, tn=tn, tk=tk)


# ------------------------------ WSD forward -------------------------------- #
def wsd_forward(params: dict, batch: dict, *, force_pallas: bool = False,
                tm=None, tn=None, tk=None) -> jax.Array:
    """Mirrors WSDModel.forward with sequence_encoder = IdentityLayer."""
    word_ids = batch["input_ids"]                    # [B, T_sub] int32
    subword_indices = batch["word_pieces_indexes"]   # [B, T_word] int32
    # lengths = batch["lengths"]  # carried for API parity; masking assumed downstream

    # word_encoder: gather token ids first, then ONE embedding lookup
    # (avoids materializing a [B, T_sub, H] intermediate).
    # TODO(synk): the real word_encoder is a hydra-instantiated pretrained LM;
    # modeled here as an embedding table + first-subword selection.
    gathered_ids = jnp.take_along_axis(word_ids, subword_indices, axis=1)  # [B, T_word]
    word_repr = jnp.take(params["word_embedding"], gathered_ids, axis=0)   # [B, T_word, H]

    # sequence_encoder: IdentityLayer -> (x, None)
    sequence_out = word_repr

    # output_layer (Pallas hot path): Linear(hidden_size, n_classes)
    B, Tw, H = sequence_out.shape
    C = params["out_w"].shape[1]
    logits2d = linear_output_layer(
        sequence_out.reshape(B * Tw, H),
        params["out_w"], params["out_b"],
        force_pallas=force_pallas, tm=tm, tn=tn, tk=tk,
    )
    return logits2d.reshape(B, Tw, C)


# ------------------------------ parameters --------------------------------- #
def init_params(key, vocab_size: int, hidden_size: int, n_classes: int) -> dict:
    k_emb, k_w, k_b = jax.random.split(key, 3)
    return {
        # "language_model" params (word_embedding)
        "word_embedding": jax.random.normal(
            k_emb, (vocab_size, hidden_size), dtype=jnp.float32) * 0.02,
        # "base" params (output_layer) — stored [H, C] (transposed vs torch),
        # weights kept in bf16 to halve the dominant HBM weight traffic.
        "out_w": (jax.random.normal(
            k_w, (hidden_size, n_classes), dtype=jnp.float32) * 0.02
                  ).astype(jnp.bfloat16),
        "out_b": jax.random.normal(k_b, (n_classes,), dtype=jnp.float32) * 0.02,
    }


# --------------------------------- main ------------------------------------ #
if __name__ == "__main__":
    B, T_SUB, T_WORD = 2, 24, 16
    VOCAB, HIDDEN, N_CLASSES = 128, 256, 200   # N_CLASSES not 128-aligned on purpose

    key = jax.random.PRNGKey(0)
    k_par, k_ids, k_idx = jax.random.split(key, 3)

    params = init_params(k_par, VOCAB, HIDDEN, N_CLASSES)

    batch = {
        "input_ids": jax.random.randint(
            k_ids, (B, T_SUB), 0, VOCAB, dtype=jnp.int32),
        "word_pieces_indexes": jnp.sort(
            jax.random.randint(k_idx, (B, T_WORD), 0, T_SUB, dtype=jnp.int32),
            axis=-1),
        "lengths": jnp.full((B,), T_WORD, dtype=jnp.int32),
    }

    # Small tiles at demo size so the (M, N, K) grid and the K-accumulator
    # epilogue are actually exercised: grid = (2, 2, 2).
    logits = wsd_forward(params, batch, force_pallas=True, tm=16, tn=128, tk=128)
    jax.block_until_ready(logits)

    # pure-JAX reference with the same bf16 operands / f32 accumulation
    gathered_ids = jnp.take_along_axis(
        batch["input_ids"], batch["word_pieces_indexes"], axis=1)
    wr = jnp.take(params["word_embedding"], gathered_ids, axis=0)
    x_ref = wr.reshape(B * T_WORD, HIDDEN).astype(jnp.bfloat16).astype(jnp.float32)
    w_ref = params["out_w"].astype(jnp.float32)
    ref = (x_ref @ w_ref + params["out_b"]).reshape(B, T_WORD, N_CLASSES)

    assert logits.shape == (B, T_WORD, N_CLASSES)
    assert jnp.allclose(logits, ref, atol=1e-3, rtol=1e-3)

    print("KERNEL_OK")
</pallas_src>

<mosaic_0001>
module attributes {stable_mosaic.version = 11 : i64} {
  func.func @_linear_kernel(%arg0: i32, %arg1: i32, %arg2: i32, %arg3: memref<16x128xbf16, #tpu.memory_space<vmem>>, %arg4: memref<128x128xbf16, #tpu.memory_space<vmem>>, %arg5: memref<1x128xf32, #tpu.memory_space<vmem>>, %arg6: memref<16x128xf32, #tpu.memory_space<vmem>>, %arg7: memref<16x128xf32, #tpu.memory_space<vmem>>) attributes {dimension_semantics = [#tpu.dimension_semantics<parallel>, #tpu.dimension_semantics<parallel>, #tpu.dimension_semantics<arbitrary>], iteration_bounds = array<i64: 2, 2, 2>, scalar_prefetch = 0 : i64, scratch_operands = 1 : i64, tpu.core_type = #tpu.core_type<tc>, window_params = [{transform_indices = @transform_0, window_bounds = array<i64: 16, 128>}, {transform_indices = @transform_1, window_bounds = array<i64: 128, 128>}, {transform_indices = @transform_2, window_bounds = array<i64: 1, 128>}, {transform_indices = @transform_3, window_bounds = array<i64: 16, 128>}]} {
    %c0_i32 = arith.constant 0 : i32
    %0 = arith.cmpi eq, %arg2, %c0_i32 : i32
    %1 = arith.extui %0 : i1 to i32
    %c0_i32_0 = arith.constant 0 : i32
    %2 = arith.cmpi ne, %1, %c0_i32_0 : i32
    scf.if %2 {
      %cst_9 = arith.constant 0.000000e+00 : f32
      %12 = vector.broadcast %cst_9 : f32 to vector<16x128xf32>
      %c0_10 = arith.constant 0 : index
      %c0_11 = arith.constant 0 : index
      %13 = vector.load %arg7[%c0_10, %c0_11] : memref<16x128xf32, #tpu.memory_space<vmem>>, vector<16x128xf32>
      tpu.vector_store %arg7[%c0_10, %c0_11], %12 {strides = array<i32>} : memref<16x128xf32, #tpu.memory_space<vmem>>, vector<16x128xf32>,
    } else {
    }
    %c0 = arith.constant 0 : index
    %c0_1 = arith.constant 0 : index
    %3 = vector.load %arg7[%c0, %c0_1] : memref<16x128xf32, #tpu.memory_space<vmem>>, vector<16x128xf32>
    %c0_2 = arith.constant 0 : index
    %c0_3 = arith.constant 0 : index
    %4 = vector.load %arg3[%c0_2, %c0_3] : memref<16x128xbf16, #tpu.memory_space<vmem>>, vector<16x128xbf16>
    %c0_4 = arith.constant 0 : index
    %c0_5 = arith.constant 0 : index
    %5 = vector.load %arg4[%c0_4, %c0_5] : memref<128x128xbf16, #tpu.memory_space<vmem>>, vector<128x128xbf16>
    %cst = arith.constant dense<0.000000e+00> : vector<16x128xf32>
    %6 = tpu.matmul %4, %5, %cst {dimension_numbers = #tpu.dot_dimension_numbers<[1], [0], [0], [1], [0, 0, 1, 1], [], []>} : vector<16x128xbf16>, vector<128x128xbf16>, vector<16x128xf32> -> vector<16x128xf32>
    %7 = arith.addf %3, %6 : vector<16x128xf32>
    %c0_6 = arith.constant 0 : index
    %c0_7 = arith.constant 0 : index
    %8 = vector.load %arg7[%c0_6, %c0_7] : memref<16x128xf32, #tpu.memory_space<vmem>>, vector<16x128xf32>
    tpu.vector_store %arg7[%c0_6, %c0_7], %7 {strides = array<i32>} : memref<16x128xf32, #tpu.memory_space<vmem>>, vector<16x128xf32>,
    %c1_i32 = arith.constant 1 : i32
    %9 = arith.cmpi eq, %arg2, %c1_i32 : i32
    %10 = arith.extui %9 : i1 to i32
    %c0_i32_8 = arith.constant 0 : i32
    %11 = arith.cmpi ne, %10, %c0_i32_8 : i32
    scf.if %11 {
      %c0_9 = arith.constant 0 : index
      %c0_10 = arith.constant 0 : index
      %12 = vector.load %arg7[%c0_9, %c0_10] : memref<16x128xf32, #tpu.memory_space<vmem>>, vector<16x128xf32>
      %c0_11 = arith.constant 0 : index
      %c0_12 = arith.constant 0 : index
      %13 = vector.load %arg5[%c0_11, %c0_12] : memref<1x128xf32, #tpu.memory_space<vmem>>, vector<1x128xf32>
      %14 = vector.broadcast %13 : vector<1x128xf32> to vector<16x128xf32>
      %15 = arith.addf %12, %14 : vector<16x128xf32>
      %c0_13 = arith.constant 0 : index
      %c0_14 = arith.constant 0 : index
      %16 = vector.load %arg6[%c0_13, %c0_14] : memref<16x128xf32, #tpu.memory_space<vmem>>, vector<16x128xf32>
      tpu.vector_store %arg6[%c0_13, %c0_14], %15 {strides = array<i32>} : memref<16x128xf32, #tpu.memory_space<vmem>>, vector<16x128xf32>,
    } else {
    }
    return
  }
  func.func @transform_0(%arg0: i32, %arg1: i32, %arg2: i32) -> (i32, i32) {
    %c0_i32 = arith.constant 0 : i32
    return %arg0, %arg2 : i32, i32
  }
  func.func @transform_1(%arg0: i32, %arg1: i32, %arg2: i32) -> (i32, i32) {
    %c0_i32 = arith.constant 0 : i32
    return %arg2, %arg1 : i32, i32
  }
  func.func @transform_2(%arg0: i32, %arg1: i32, %arg2: i32) -> (i32, i32) {
    %c0_i32 = arith.constant 0 : i32
    %c0_i32_0 = arith.constant 0 : i32
    return %c0_i32, %arg1 : i32, i32
  }
  func.func @transform_3(%arg0: i32, %arg1: i32, %arg2: i32) -> (i32, i32) {
    %c0_i32 = arith.constant 0 : i32
    return %arg0, %arg1 : i32, i32
  }
}

</mosaic_0001>

<bundles_post_ra>
// kernel: tpu_custom_call.1
= control target key start
LH: loop header
LB: loop body
LE: loop exit
PB: predicated region body
PF: predicated region fallthrough
CT: control target
= control target key end

     0   :  { %s1475_s0 = inlined_call_operand.hbm [shape: bf16[32,256], index: 0, kind: input, shape index: {}]   ;;  %s1476_s1 = inlined_call_operand.hbm [shape: bf16[256,256], index: 1, kind: input, shape index: {}]   ;;  %s1477_s2 = inlined_call_operand.vmem [shape: f32[1,256], index: 2, kind: input, shape index: {}]   ;;  %s1478_s3 = inlined_call_operand.hbm [shape: f32[32,256], index: 3, kind: output, shape index: {}]  }
   0x1   :  { %1496 = sst [smem:[#allocation19_spill]] %s1475_s0 }
   0x2   :  { %1497 = sst [smem:[#allocation20_spill]] %s1476_s1 }
   0x3   :  { %1498 = sst [smem:[#allocation21_spill]] %s1478_s3 }
   0x4   :  { %8 = vsyncpa [#allocation4], 0 }
   0x5   :  { %10 = vsyncpa [#allocation4 + $0x1], 0 }
   0x6   :  { %11 = vsyncpa [#allocation7], 0 }
   0x7   :  { %13 = vsyncpa [#allocation7 + $0x1], 0 }
   0x8   :  { %14 = vsyncpa [#allocation5], 0 }
   0x9   :  { %16 = vsyncpa [#allocation5 + $0x1], 0  ;;  %s1053_s12 = smov 0   ;;  %s1055_s13 = smov 0  }
   0xa   :  { %s1057_s14 = smov 0   ;;  %s1059_s15 = smov 0  }
   0xb   :  { %s1061_s16 = smov 0   ;;  %s1063_s17 = smov 0  }
   0xc   :  { %s1065_s18 = smov 0   ;;  %s1067_s19 = smov 0  }
   0xd   :  { %s1069_s20 = smov 0   ;;  %s1071_s21 = smov 0  }
   0xe   :  { %s1073_s22 = smov 0   ;;  %s1075_s23 = smov 0  }
   0xf   :  { %s1077_s24 = smov 0   ;;  %s1079_s25 = smov 0  }
  0x10   :  { %s1081_s26 = smov 0   ;;  %s1083_s27 = smov 0  }
  0x11 LB: > { %1499 = sst [smem:[#allocation12_spill]] %s995_s21  ;;  %s34_s28 = sadd.s32 1, %s1007_s24  ;;  %s1019_s27 = sphi %s1083_s27, %s22_s27   ;;  %s1015_s26 = sphi %s1081_s26, %s1541_s26   ;;  %s1011_s25 = sphi %s1079_s25, %s1554_s25   ;;  %s1007_s24 = sphi %s1077_s24, %s1553_s24   ;;  %s1003_s23 = sphi %s1075_s23, %s1538_s23   ;;  %s999_s22 = sphi %s1073_s22, %s1552_s22   ;;  %s995_s21 = sphi %s1071_s21, %s1551_s21   ;;  %s991_s20 = sphi %s1069_s20, %s1550_s20   ;;  %s987_s19 = sphi %s1067_s19, %s1549_s19   ;;  %s983_s18 = sphi %s1065_s18, %s1548_s18   ;;  %s979_s17 = sphi %s1063_s17, %s1547_s17   ;;  %s975_s16 = sphi %s1061_s16, %s1546_s16   ;;  %s971_s15 = sphi %s1059_s15, %s1545_s15   ;;  %s967_s14 = sphi %s1057_s14, %s1544_s14   ;;  %s963_s13 = sphi %s1055_s13, %s1543_s13   ;;  %s959_s12 = sphi %s1053_s12, %s1542_s12  }
  0x12   : > { %1500 = sst [smem:[#allocation13_spill]] %s1003_s23  ;;  %s1479_s29 = sadd.s32 4294967295, %s1019_s27  }
  0x13   : > { %1501 = sst [smem:[#allocation14_spill]] %s1015_s26  ;;  %p1133_p0 = scmp.ge.s32.totalorder %s34_s28, 2 }
  0x14   : > { %p57_p1 = scmp.ne.s32.totalorder %s991_s20, %s987_s19  ;;  %p1483_p2 = scmp.eq.s32.totalorder %s1019_s27, 0 }
  0x15   : > { %s1556_s28 = smov (%p1133_p0, %s34_s28), 0  ;;  %p63_p3 = scmp.ne.s32.totalorder %s987_s19, %s983_s18 }
  0x16   : > { %1503 = sst [smem:[#allocation15_spill]] %s1556_s28  ;;  %p1149_p4 = scmp.eq.s32.totalorder %s1479_s29, 0 }
  0x17   : > { %s1155_s7 = ssub.s32 %s1007_s24, %s1556_s28  ;;  %p59_p5 = por %p1483_p2, %p57_p1 }
  0x18   : > { %s1504_s6 = scalar_select %p1149_p4, 1, 0 }
  0x19   : > { %p1161_p6 = por %p1149_p4, %p63_p3  ;;  %p1482_p7 = scmp.lt.s32.totalorder %s1019_s27, 8 }
  0x1a   : > { %s169_s9 = sand.u32 1, %s991_s20   ;;  %s596_s11 = sshll.u32 %s1015_s26, 2 }
  0x1b   : > { %s1505_s8 = scalar_select %p1161_p6, 1, 0 }
  0x1c   : > { %s566_s10 = sshll.u32 %s169_s9, 3  ;;  %s179_s18 = sadd.s32 %s1007_s24, %s596_s11 }
  0x1d   : > { %s173_s5 = scalar_lea.vmem [#allocation3], %s566_s10  ;;  %s569_s29 = sshll.u32 %s179_s18, 6 }
  0x1e   : > { %s182_s4 = sshll.u32 %s173_s5, 4  ;;  %s1506_s0 = sld [smem:[#allocation19_spill]]  ;;  %s1169_s4 = int_to_ptr.vmem [resolvable:$true] %s182_s4 }
  0x1f   : > { %p1178_p8 = pnand %p1482_p7, %p59_p5  ;;  %s1182_s5 = scalar_lea.sflag [#allocation4], %s169_s9 }
  0x21   : > { %p795_p10 = pneg %p1178_p8 }
  0x24   : > { %s1174_s23 = scalar_lea.hbm %s1506_s0, %s569_s29  ;;  %s798_s29 = scalar_lea.hbm %s1506_s0, 512 }
  0x25   : > { %s793_s10 = scalar_lea.hbm %s1174_s23, 128  ;;  %p799_p13 = scmp.lt.u32.totalorder %s1174_s23, %s1506_s0 }
  0x26   : > { %p794_p9 = scmp.ne.s32.totalorder %s1174_s23, %s793_s10  ;;  %p800_p1 = scmp.lt.u32.totalorder %s798_s29, %s793_s10 }
  0x27   : > { %p802_p5 = scmp.lt.u32.totalorder %s793_s10, %s1174_s23 }
  0x28   : > { %p796_p11 = pnand %p795_p10, %p794_p9  ;;  %p801_p3 = por %p800_p1, %p799_p13 }
  0x2a   : > { %p797_p12 = pneg %p796_p11  ;;  %p803_p7 = por %p802_p5, %p801_p3 }
  0x2c   : > { %p804_p2 = pnand %p803_p7, %p797_p12 }
  0x2e   : > { %807 = shalt.err (!%p804_p2)
}
  0x2f   : > { %s808_s9 = scalar_lea.vmem %s1169_s4, 128  ;;  %s1021_s3 = smov [#allocation3]  }
  0x30   : > { %p809_p9 = scmp.ne.s32.totalorder %s1169_s4, %s808_s9  ;;  %s813_s28 = sshll.u32 %s1021_s3, 4  ;;  %s814_s28 = int_to_ptr.vmem [resolvable:$false] %s813_s28 }
  0x31   : > { %s815_s11 = scalar_lea.vmem %s814_s28, 256  ;;  %p816_p4 = scmp.lt.s32.totalorder %s1169_s4, %s814_s28 }
  0x32   : > { %p811_p11 = pnand %p809_p9, %p795_p10  ;;  %p817_p13 = scmp.lt.s32.totalorder %s815_s11, %s808_s9 }
  0x34   : > { %p812_p6 = pneg %p811_p11  ;;  %p818_p1 = por %p817_p13, %p816_p4 }
  0x36   : > { %p819_p3 = pnand %p818_p1, %p812_p6 }
  0x38   : > { %822 = shalt.err (!%p819_p3)
}
  0x39   : > { %s1486_s10 = smov 128   ;;  %s1487_s29 = smov 64  }
  0x3a   : > { %s1488_s18 = smov 4   ;;  %p574_p2 = scmp.ge.s32.totalorder %s1019_s27, 1 }
  0x3b   : > { %637 = dma.hbm_to_vmem [thread:$0]  (!%p1178_p8), %s1174_s23, 128, %s1169_s4, %s1182_s5, %s1486_s10, %s1487_s29, %s1488_s18  }
  0x3c   : > { %p219_p4 = scmp.lt.s32.totalorder %s1019_s27, 9  ;;  %s1508_s9 = sadd.s32 4294967295, %s1019_s27  }
  0x3d   : > { %p1217_p6 = scmp.eq.s32.totalorder %s1508_s9, 7  ;;  %s563_s21 = sadd.s32 4294967294, %s1019_s27  }
  0x3e   : > { %p1221_p7 = pnand %p574_p2, %p219_p4  ;;  %s37_s11 = sadd.s32 1, %s1011_s25 }
  0x3f   : > { %s1558_s11 = smov (!%p1133_p0, %s37_s11), %s1011_s25  ;;  %s78_s23 = sadd.s32 1, %s979_s17 }
  0x40   : > { %p91_p8 = scmp.ne.s32.totalorder %s975_s16, %s971_s15  ;;  %p39_p10 = scmp.ge.s32.totalorder %s1558_s11, 2 }
  0x41   : > { %p85_p12 = scmp.ne.s32.totalorder %s979_s17, %s975_s16  ;;  %p1511_p5 = scmp.ne.s32.totalorder %s1504_s6, 0 }
  0x42   : > { %s132_s5 = sadd.s32 1, %s967_s14  ;;  %s1560_s11 = smov (%p39_p10, %s1558_s11), 0 }
  0x43   : > { %p1237_p9 = por %p91_p8, %p1511_p5  ;;  %1513 = sst [smem:[#allocation16_spill]] %s1560_s11 }
  0x44   : > { %s1514_s9 = sadd.s32 1, %s1015_s26  ;;  %s74_s30 = ssub.s32 %s1011_s25, %s1560_s11 }
  0x45   : > { %s1512_s4 = scalar_select %p1237_p9, 1, 0 }
  0x46   : > { %s1562_s9 = smov (!%p39_p10, %s1514_s9), %s1015_s26  ;;  %p142_p0 = scmp.ne.s32.totalorder %s967_s14, %s963_s13 }
  0x47   : > { %p43_p11 = scmp.ge.s32.totalorder %s1562_s9, 2  ;;  %s75_s15 = sor.u32 %s74_s30, %s1155_s7 }
  0x48   : > { %p76_p13 = scmp.eq.s32.totalorder %s75_s15, 0  ;;  %p1254_p1 = por %p1217_p6, %p142_p0 }
  0x49   : > { %s1564_s9 = smov (%p43_p11, %s1562_s9), 0  ;;  %p148_p3 = scmp.ne.s32.totalorder %s963_s13, %s959_s12 }
  0x4a   : > { %s1515_s6 = scalar_select %p1254_p1, 1, 0 }
  0x4b   : > { %1517 = sst [smem:[#allocation18_spill]] %s1564_s9  ;;  %s45_s29 = ssub.s32 %s1015_s26, %s1564_s9 }
  0x4c   : > { %1516 = sst [smem:[#allocation17_spill]] %s1515_s6  ;;  %s47_s18 = sor.u32 %s1155_s7, %s45_s29 }
  0x4d   : > { %s1261_s10 = scalar_select %p76_p13, %s979_s17, %s78_s23  }
  0x4e   : > { %s129_s0 = sor.u32 %s74_s30, %s45_s29  ;;  %p48_p2 = scmp.eq.s32.totalorder %s47_s18, 0 }
  0x4f   : > { %p130_p4 = scmp.eq.s32.totalorder %s129_s0, 0  ;;  %p149_p8 = scmp.eq.s32.totalorder %s563_s21, 7 }
  0x50   : > { %s192_s3 = sand.u32 1, %s979_s17   ;;  %s1518_s15 = sadd.s32 1, %s991_s20 }
  0x51   : > { %s1272_s11 = scalar_select %p48_p2, %s991_s20, %s1518_s15  }
  0x52   : > { %s1275_s6 = scalar_select %p130_p4, %s967_s14, %s132_s5  }
  0x53   : > { %p1519_p6 = scmp.eq.s32.totalorder %s1019_s27, 0  ;;  %p1282_p5 = por %p149_p8, %p148_p3 }
  0x54   : > { %s570_s9 = sshll.u32 %s192_s3, 6  ;;  %s597_s7 = sshll.u32 %s1007_s24, 5 }
  0x55   : > { %p87_p10 = por %p85_p12, %p1519_p6  ;;  %s202_s29 = sadd.s32 %s1011_s25, %s597_s7 }
  0x56   : > { %s1520_s23 = scalar_select %p1282_p5, 1, 0 }
  0x57   : > { %s573_s18 = sshll.u32 %s202_s29, 6  ;;  %s196_s30 = scalar_lea.vmem [#allocation6], %s570_s9 }
  0x58   : > { %s205_s0 = sshll.u32 %s196_s30, 4  ;;  %s1521_s1 = sld [smem:[#allocation20_spill]]  ;;  %s1293_s0 = int_to_ptr.vmem [resolvable:$true] %s205_s0 }
  0x59   : > { %p1522_p12 = scmp.lt.s32.totalorder %s1019_s27, 8  ;;  %s1301_s9 = scalar_lea.sflag [#allocation7], %s192_s3 }
  0x5b   : > { %p1297_p0 = pnand %p1522_p12, %p87_p10 }
  0x5d   : > { %p825_p13 = pneg %p1297_p0 }
  0x5e   : > { %s1291_s15 = scalar_lea.hbm %s1521_s1, %s573_s18  ;;  %s828_s18 = scalar_lea.hbm %s1521_s1, 4096 }
  0x5f   : > { %s823_s7 = scalar_lea.hbm %s1291_s15, 1024  ;;  %p829_p4 = scmp.lt.u32.totalorder %s1291_s15, %s1521_s1 }
  0x60   : > { %p824_p11 = scmp.ne.s32.totalorder %s1291_s15, %s823_s7  ;;  %p830_p8 = scmp.lt.u32.totalorder %s828_s18, %s823_s7 }
  0x61   : > { %p832_p10 = scmp.lt.u32.totalorder %s823_s7, %s1291_s15 }
  0x62   : > { %p826_p3 = pnand %p825_p13, %p824_p11  ;;  %p831_p6 = por %p830_p8, %p829_p4 }
  0x64   : > { %p827_p2 = pneg %p826_p3  ;;  %p833_p12 = por %p832_p10, %p831_p6 }
  0x66   : > { %p834_p5 = pnand %p833_p12, %p827_p2 }
  0x68   : > { %837 = shalt.err (!%p834_p5)
}
  0x69   : > { %s838_s3 = scalar_lea.vmem %s1293_s0, 1024  ;;  %s1025_s26 = smov [#allocation6]  }
  0x6a   : > { %p839_p11 = scmp.ne.s32.totalorder %s1293_s0, %s838_s3  ;;  %s843_s29 = sshll.u32 %s1025_s26, 4  ;;  %s844_s29 = int_to_ptr.vmem [resolvable:$false] %s843_s29 }
  0x6b   : > { %s845_s30 = scalar_lea.vmem %s844_s29, 2048  ;;  %p846_p9 = scmp.lt.s32.totalorder %s1293_s0, %s844_s29 }
  0x6c   : > { %p841_p3 = pnand %p839_p11, %p825_p13  ;;  %p847_p4 = scmp.lt.s32.totalorder %s845_s30, %s838_s3 }
  0x6e   : > { %p842_p1 = pneg %p841_p3  ;;  %p848_p8 = por %p847_p4, %p846_p9 }
  0x70   : > { %p849_p6 = pnand %p848_p8, %p842_p1 }
  0x72   : > { %852 = shalt.err (!%p849_p6)
}
  0x73   : > { %s1524_s7 = smov 4   ;;  %s1525_s18 = smov 64  }
  0x74   : > { %s1526_s21 = smov 128   ;;  %223 = sbr.rel (%p1221_p7) target bundleno = 437 (0x1b5), region = 32 }
  0x75   : > { %640 = dma.hbm_to_vmem [thread:$0]  (!%p1297_p0), %s1291_s15, 1024, %s1293_s0, %s1301_s9, %s1526_s21, %s1525_s18, %s1524_s7  }
  0x76   : > { %s225_s26 = sand.u32 (!%p1221_p7), 1, %s987_s19   ;;  %p1527_p9 = scmp.ne.s32.totalorder (!%p1221_p7), %s1505_s8, 0 }
  0x77   : > { %s1335_s29 = sshll.u32 (!%p1221_p7), %s225_s26, 3  ;;  %s226_s3 = scalar_lea.sflag (!%p1221_p7), [#allocation4], %s225_s26 }
  0x78   : > { %s229_s30 = scalar_lea.vmem (!%p1221_p7), [#allocation3], %s1335_s29 }
  0x7b   : > { %946 = dma.done.wait (%p1527_p9), %s226_s3, 128  }
  0x7c   : > { %948 = vsyncadd (%p1527_p9), %s226_s3, 4294967168  ;;  %s234_s5 = sand.u32 1, %s975_s16   ;;  %p1528_p7 = scmp.ne.s32.totalorder %s1512_s4, 0 }
  0x7d   : > { %s576_s0 = sshll.u32 %s234_s5, 6  ;;  %s235_s15 = scalar_lea.sflag [#allocation7], %s234_s5 }
  0x7e   : > { %s1343_s28 = scalar_lea.vmem [#allocation6], %s576_s0 }
  0x7f   : > { %950 = dma.done.wait (%p1528_p7), %s235_s15, 1024  }
  0x80   : > { %952 = vsyncadd (%p1528_p7), %s235_s15, 4294966272  ;;  %s266_s9 = sand.u32 1, %s963_s13   ;;  %p271_p1 = scmp.lt.s32.totalorder %s999_s22, 1 }
  0x81   : > { %s577_s8 = sshll.u32 %s266_s9, 4  ;;  %s1529_s5 = sld [smem:[#allocation12_spill]] }
  0x82   : > { %s1354_s7 = scalar_select %p271_p1, %s999_s22, 1 }
  0x83   : > { %s1360_s3 = scalar_lea.vmem [#allocation8], %s577_s8 }
  0x84   : > { %s273_s26 = scalar_lea.vmem %s1477_s2, %s1354_s7 }
  0x87   : > { %p578_p5 = scmp.ne.s32.totalorder %s1529_s5, 0 }
  0x88   : > { %v1026_v0 = vmov (!%p578_p5), 0.0  }
  0x89   : > { %279 = sbr.rel (%p578_p5) target bundleno = 144 (0x90), region = 44  ;;  %280 = vst [vmem:[#allocation2] sm:$0xff] (!%p578_p5), %v1026_v0  ;;  %281 = vst [vmem:[#allocation2 + $0x8] sm:$0xff] (!%p578_p5), %v1026_v0 }
  0x90 PF: > { %v784_v1 = vld [vmem:[%s1343_s28] sm:$0xff]   ;;  %v1027_v2 = vmov 0.0   ;;  %v785_v3 = vld [vmem:[%s1343_s28 + $0x8] sm:$0xff]   ;;  %vm1028_vm0 = vmmov 0   ;;  %v786_v4 = vld [vmem:[%s1343_s28 + $0x10] sm:$0xff]   ;;  %s1530_s4 = sld [smem:[#allocation12_spill]] }
  0x91   : > { %608 = vmatprep.subr.bf16.mxu0 %v1027_v2  ;;  %624 = vmatprep.mubr.msk.bf16.mxu0 %vm1028_vm0, %v1027_v2  ;;  %v787_v5 = vld [vmem:[%s1343_s28 + $0x18] sm:$0xff]   ;;  %v788_v6 = vld [vmem:[%s1343_s28 + $0x20] sm:$0xff]   ;;  %v789_v7 = vld [vmem:[%s1343_s28 + $0x28] sm:$0xff]  }
  0x92   : > { %609 = vmatpush3.bf16.msra.mxu0 %v784_v1  ;;  %v790_v8 = vld [vmem:[%s1343_s28 + $0x30] sm:$0xff]   ;;  %v791_v9 = vld [vmem:[%s1343_s28 + $0x38] sm:$0xff]   ;;  %v282_v11 = vld [vmem:[#allocation2] sm:$0xff] }
  0x93   : > { %610 = vmatprep.subr.bf16.mxu0 %v1027_v2  ;;  %v792_v10 = vld [vmem:[%s229_s30] sm:$0xff]   ;;  %v283_v13 = vld [vmem:[#allocation2 + $0x8] sm:$0xff] }
  0x96   : > { %611 = vmatpush3.bf16.msra.mxu0 %v785_v3  ;;  %p588_p0 = scmp.ne.s32.totalorder %s1530_s4, 1 }
  0x97   : > { %612 = vmatprep.subr.bf16.mxu0 %v1027_v2  ;;  %v589_v20 = vld [vmem:[%s273_s26] ss:$0 sm:$0xff] (!%p588_p0) }
  0x9a   : > { %613 = vmatpush3.bf16.msra.mxu0 %v786_v4 }
  0x9b   : > { %614 = vmatprep.subr.bf16.mxu0 %v1027_v2 }
  0x9e   : > { %615 = vmatpush3.bf16.msra.mxu0 %v787_v5 }
  0x9f   : > { %616 = vmatprep.subr.bf16.mxu0 %v1027_v2 }
  0xa2   : > { %617 = vmatpush3.bf16.msra.mxu0 %v788_v6 }
  0xa3   : > { %618 = vmatprep.subr.bf16.mxu0 %v1027_v2 }
  0xa6   : > { %619 = vmatpush3.bf16.msra.mxu0 %v789_v7 }
  0xa7   : > { %620 = vmatprep.subr.bf16.mxu0 %v1027_v2 }
  0xaa   : > { %621 = vmatpush3.bf16.msra.mxu0 %v790_v8 }
  0xab   : > { %622 = vmatprep.subr.bf16.mxu0 %v1027_v2 }
  0xae   : > { %623 = vmatpush3.bf16.msra.mxu0 %v791_v9 }
  0xb1   : > { %625 = vmatmul.mubr.bf16.vlgmr.msra.gmra.mrb[0].mxu0 %v792_v10 }
 0x183   : > { %404 = sbr.rel (%p588_p0) target bundleno = 404 (0x194), region = 48 }
 0x184   : > { %v390_v12 = vpop.f32.mrb[0].mxu0 }
 0x185   : > { %v397_v14 = vadd.f32 %v390_v12, %v282_v11  ;;  %v626_v15 = vpop.f32.mrb[1].mxu0 }
 0x186   : > { %v393_v16 = vpop.f32.mrb[2].mxu0 }
 0x187   : > { %399 = vst [vmem:[#allocation2] sm:$0xff] %v397_v14  ;;  %v398_v17 = vadd.f32 %v393_v16, %v283_v13  ;;  %v627_v18 = vpop.f32.mrb[3].mxu0 }
 0x189   : > { %400 = vst [vmem:[#allocation2 + $0x8] sm:$0xff] %v398_v17 }
 0x18e   : > { %v405_v19 = vld [vmem:[#allocation2] sm:$0xff] }
 0x18f   : > { %v414_v22 = vadd.f32 %v589_v20, %v405_v19 }
 0x190   : > { %v406_v21 = vld [vmem:[#allocation2 + $0x8] sm:$0xff] }
 0x191   : > { %v415_v23 = vadd.f32 %v589_v20, %v406_v21  ;;  %416 = vst [vmem:[%s1360_s3] sm:$0xff] %v414_v22 }
 0x193   : > { %417 = vst [vmem:[%s1360_s3 + $0x8] sm:$0xff] %v415_v23 }
 0x194 PF: > { %s1531_s29 = sld [smem:[#allocation13_spill]]  ;;  %s1532_s30 = sld [smem:[#allocation17_spill]] }
 0x195   : > { %s434_s18 = sshll.u32 %s1360_s3, 4  ;;  %s1533_s26 = sld [smem:[#allocation21_spill]]  ;;  %s1384_s18 = int_to_ptr.vmem [resolvable:$true] %s434_s18 }
 0x196   : > { %s1393_s15 = scalar_lea.sflag [#allocation5], %s266_s9  ;;  %s853_s1 = scalar_lea.vmem %s1384_s18, 256 }
 0x197   : > { %p854_p13 = scmp.ne.s32.totalorder %s1384_s18, %s853_s1 }
 0x19a   : > { %s598_s28 = sshll.u32 %s1531_s29, 2  ;;  %p1535_p2 = scmp.ne.s32.totalorder %s1532_s30, 0 }
 0x19b   : > { %s431_s8 = sadd.s32 %s999_s22, %s598_s28  ;;  %s1534_s4 = smov %s1533_s26 }
 0x19c   : > { %s593_s21 = sshll.u32 %s431_s8, 7  ;;  %p855_p10 = pnand %p854_p13, %p1535_p2 }
 0x19d   : > { %s1389_s0 = scalar_lea.hbm %s1533_s26, %s593_s21  ;;  %s1029_s22 = smov [#allocation8]  }
 0x19e   : > { %p856_p12 = pneg %p855_p10  ;;  %s857_s3 = sshll.u32 %s1029_s22, 4  ;;  %s858_s3 = int_to_ptr.vmem [resolvable:$false] %s857_s3 }
 0x19f   : > { %s859_s29 = scalar_lea.vmem %s858_s3, 512  ;;  %p860_p11 = scmp.lt.s32.totalorder %s1384_s18, %s858_s3 }
 0x1a0   : > { %p861_p3 = scmp.lt.s32.totalorder %s859_s29, %s853_s1 }
 0x1a2   : > { %p862_p4 = por %p861_p3, %p860_p11 }
 0x1a4   : > { %p863_p8 = pnand %p862_p4, %p856_p12 }
 0x1a6   : > { %866 = shalt.err (!%p863_p8)
}
 0x1a7   : > { %s867_s9 = scalar_lea.hbm %s1389_s0, 256  ;;  %s871_s21 = scalar_lea.hbm %s1534_s4, 1024 }
 0x1a8   : > { %p868_p6 = scmp.ne.s32.totalorder %s1389_s0, %s867_s9  ;;  %p872_p1 = scmp.lt.u32.totalorder %s1389_s0, %s1534_s4 }
 0x1a9   : > { %p873_p5 = scmp.lt.u32.totalorder %s871_s21, %s867_s9  ;;  %p875_p13 = scmp.lt.u32.totalorder %s867_s9, %s1389_s0 }
 0x1aa   : > { %p869_p9 = pnand %p868_p6, %p1535_p2 }
 0x1ab   : > { %p874_p0 = por %p873_p5, %p872_p1 }
 0x1ac   : > { %p870_p7 = pneg %p869_p9 }
 0x1ad   : > { %p876_p10 = por %p875_p13, %p874_p0 }
 0x1af   : > { %p877_p12 = pnand %p876_p10, %p870_p7 }
 0x1b1   : > { %880 = shalt.err (!%p877_p12)
}
 0x1b2   : > { %s1030_s1 = smov 128   ;;  %s1031_s26 = smov 256  }
 0x1b3   : > { %s1032_s22 = smov 8  }
 0x1b4   : > { %632 = dma.vmem_to_hbm [thread:$0]  (%p1535_p2), %s1384_s18, 256, %s1389_s0, %s1393_s15, %s1030_s1, %s1031_s26, %s1032_s22  }
 0x1b5 PF: > { %p646_p11 = scmp.ge.s32.totalorder %s1019_s27, 2  ;;  %s449_s3 = sand.u32 1, %s959_s12  }
 0x1b6   : > { %p1536_p3 = scmp.ne.s32.totalorder %s1520_s23, 0  ;;  %s450_s29 = scalar_lea.sflag [#allocation5], %s449_s3 }
 0x1b8   : > { %p642_p4 = pnand %p646_p11, %p1536_p3 }
 0x1ba   : > { %954 = dma.done.wait (!%p642_p4), %s450_s29, 256  }
 0x1bb   : > { %956 = vsyncadd (!%p642_p4), %s450_s29, 4294967040  ;;  %s22_s27 = sadd.s32 1, %s1019_s27   ;;  %s1538_s23 = sld [smem:[#allocation14_spill]] }
 0x1bc   : > { %p1422_p8 = scmp.ge.s32.totalorder %s22_s27, 10   ;;  %s1539_s30 = sld [smem:[#allocation15_spill]] }
 0x1bd   : > { %s1540_s0 = sld [smem:[#allocation16_spill]]  ;;  %s1541_s26 = sld [smem:[#allocation18_spill]] }
 0x1be   : > { %s1542_s12 = smov %s963_s13  ;;  %s1543_s13 = smov %s967_s14 }
 0x1bf   : > { %s1544_s14 = smov %s1275_s6  ;;  %s1545_s15 = smov %s975_s16 }
 0x1c0   : > { %s1546_s16 = smov %s979_s17  ;;  %s1547_s17 = smov %s1261_s10 }
 0x1c1   : > { %s1548_s18 = smov %s987_s19  ;;  %s1549_s19 = smov %s991_s20 }
 0x1c2   : > { %s1550_s20 = smov %s1272_s11  ;;  %s1551_s21 = smov %s1007_s24 }
 0x1c3   : > { %s1552_s22 = smov %s1011_s25  ;;  %s1553_s24 = smov %s1539_s30 }
 0x1c4   : > { %s1554_s25 = smov %s1540_s0  ;;  %21 = sbr.rel (!%p1422_p8) target bundleno = 17 (0x11), region = 101 }
 0x1cb   :  { %455 = vsyncpa [#allocation4], 1 }
 0x1cc   :  { %457 = vsyncpa [#allocation4 + $0x1], 1 }
 0x1cd   :  { %458 = vsyncpa [#allocation7], 1 }
 0x1ce   :  { %460 = vsyncpa [#allocation7 + $0x1], 1 }
 0x1cf   :  { %461 = vsyncpa [#allocation5], 1 }
 0x1d0   :  { %463 = vsyncpa [#allocation5 + $0x1], 1 }

</bundles_post_ra>
